<compile_context>
chip_gen: v5e
topology: v5e:2x2
jax: 0.10.0
libtpu: 0.0.40
codegen_flags: <defaults>
</compile_context>

<pallas_src>
import functools

import jax
import jax.numpy as jnp
from jax.experimental import pallas as pl
from jax.experimental.pallas import tpu as pltpu


def _contrastive_tile_kernel(lab_q_ref, lab_k_ref, q_ref, k_ref, out_ref,
                             m_scr, lall_scr, lpos_scr,
                             *, num_valid_rows, num_padded_cols):
    qi = pl.program_id(0)
    ki = pl.program_id(1)
    tq = q_ref.shape[0]
    tk = k_ref.shape[0]

    # --- init per-row online-softmax accumulators at the first key tile of each query tile ---
    @pl.when(ki == 0)
    def _():
        m_scr[...] = jnp.full_like(m_scr, -jnp.inf)
        lall_scr[...] = jnp.zeros_like(lall_scr)
        lpos_scr[...] = jnp.zeros_like(lpos_scr)

    # sim[i, j] = <(x_i/||x_i||)/T, x_j/||x_j||>. Operands are pre-normalized (bf16 by default,
    # 1/T already folded into the query copy); contract dim 1 of BOTH operands (no k.T copy).
    sim = jax.lax.dot_general(q_ref[...], k_ref[...], (((1,), (1,)), ((), ())),
                              preferred_element_type=jnp.float32)      # (tq, tk) f32

    # --- online softmax update (all elementwise math in f32) ---
    m_prev = m_scr[...]
    m_new = jnp.maximum(m_prev, jnp.max(sim, axis=1, keepdims=True))
    alpha = jnp.exp(m_prev - m_new)
    p = jnp.exp(sim - m_new)

    # Exclude the diagonal (and zero-padded key columns) exactly — but only on the few tiles that
    # actually cross them; every other grid step skips the iota/compare/select (VALU is the
    # binding slot for small/medium D).
    row0 = qi * tq
    col0 = ki * tk
    need_mask = jnp.logical_and(row0 < col0 + tk, col0 < row0 + tq)    # tile crosses the diagonal
    if num_padded_cols > 0:
        need_mask = jnp.logical_or(need_mask, col0 + tk > num_valid_rows)

    def _apply_mask(pt):
        rows = row0 + jax.lax.broadcasted_iota(jnp.int32, (tq, tk), 0)
        cols = col0 + jax.lax.broadcasted_iota(jnp.int32, (tq, tk), 1)
        keep = rows != cols
        if num_padded_cols > 0:
            keep = jnp.logical_and(keep, cols < num_valid_rows)
        return jnp.where(keep, pt, 0.0)

    p_nd = jax.lax.cond(need_mask, _apply_mask, lambda pt: pt, p)

    # Label mask: sublane-oriented (tq,1) query labels vs lane-dense (1,tk) key labels
    # (no in-kernel transpose, no (B,B) materialization).
    same = lab_q_ref[...] == lab_k_ref[...]
    p_pos = jnp.where(same, p_nd, 0.0)

    lall_scr[...] = alpha * lall_scr[...] + jnp.sum(p_nd, axis=1, keepdims=True)
    lpos_scr[...] = alpha * lpos_scr[...] + jnp.sum(p_pos, axis=1, keepdims=True)
    m_scr[...] = m_new

    # --- finalize per query row on the last key tile ---
    # NOTE: relies on the key axis staying the innermost "arbitrary" grid axis.
    @pl.when(ki == pl.num_programs(1) - 1)
    def _():
        pos_raw = lpos_scr[...]
        all_raw = lall_scr[...]
        loss = jnp.log(jnp.maximum(all_raw, 1e-8)) - jnp.log(jnp.maximum(pos_raw, 1e-8))
        valid = (pos_raw > 1e-8).astype(jnp.float32)                   # matches torch valid_mask
        # Merged (loss*valid, valid) output: single full-block store instead of two masked ones.
        lane = jax.lax.broadcasted_iota(jnp.int32, (tq, 2), 1)
        out_ref[...] = jnp.where(lane == 0, loss * valid, valid)


def _choose_tile(total, target, quantum):
    """Largest divisor of `total` that is <= target and a multiple of `quantum`
    (falls back to the full extent, which is always a legal block dim)."""
    t = min(target, total)
    best = total
    for cand in range(quantum, t + 1, quantum):
        if total % cand == 0:
            best = cand
    return best


def _vmem_estimate(tq, tk, d, op_bytes):
    emb = 2 * (tq + tk) * d * op_bytes          # double-buffered q / k embedding tiles
    lab = 2 * (tq * 128 + 8 * tk) * 4           # label blocks after (8,128) padding
    out = 2 * tq * 128 * 4                      # (tq, 2) output block, lane-padded
    scr = 3 * tq * 128 * 4                      # row-max / all-sum / pos-sum accumulators
    tmp = 5 * tq * tk * 4                       # live f32 (tq, tk) elementwise temporaries
    return emb + lab + out + scr + tmp


def stable_contrastive_loss(embeddings, labels, temperature=0.1, *,
                            block_q=512, block_k=256, matmul_dtype=jnp.bfloat16,
                            key_buffers=2):
    """Pallas TPU implementation of StableContrastiveLoss.forward."""
    B, D = embeddings.shape

    # --- hoisted pre-pass (one XLA pass): F.normalize(dim=1) (torch eps=1e-12), fold 1/T into
    #     the query operand, cast once to the MXU operand dtype. Not redone per key tile.
    #     (Folding 1/T before the bf16 cast rounds slightly differently than sim/T — documented
    #      by the looser bf16 tolerance below.)
    x = embeddings.astype(jnp.float32)
    inv_norm = jax.lax.rsqrt(jnp.maximum(jnp.sum(x * x, axis=1, keepdims=True), 1e-24))
    xn = x * inv_norm
    q_op = (xn * (1.0 / float(temperature))).astype(matmul_dtype)
    k_op = xn.astype(matmul_dtype)
    labels = labels.reshape(-1).astype(jnp.int32)

    # --- pad batch to a multiple of 128 so tiles stay (8,128)-aligned and the pipeline intact ---
    Bp = ((B + 127) // 128) * 128
    pad = Bp - B
    if pad > 0:
        q_op = jnp.pad(q_op, ((0, pad), (0, 0)))
        k_op = jnp.pad(k_op, ((0, pad), (0, 0)))
        labels = jnp.pad(labels, (0, pad))      # pad label value irrelevant: padded key columns
                                                # are masked in-kernel, padded query rows sliced off
    lab_col = labels.reshape(Bp, 1)             # sublane-oriented query labels
    lab_row = labels.reshape(1, Bp)             # lane-dense key labels

    # --- tile selection ---
    tq = _choose_tile(Bp, block_q, 8)
    tk = _choose_tile(Bp, block_k, 128)
    if Bp // tq < 2 and Bp >= 16:               # v7x megacore: keep >=2 tiles on the parallel axis
        tq = _choose_tile(Bp, Bp // 2, 8)

    # --- per-generation VMEM budget (v7x: 64 MiB physical, v5e/v6e: 128 MiB) ---
    try:
        phys_vmem = int(pltpu.get_tpu_info().vmem_capacity_bytes)
    except Exception:
        phys_vmem = 64 * 1024 * 1024            # conservative (v7x) fallback
    vmem_budget = max(min(phys_vmem - 16 * 1024 * 1024, 96 * 1024 * 1024), 24 * 1024 * 1024)
    op_bytes = jnp.dtype(matmul_dtype).itemsize
    while _vmem_estimate(tq, tk, D, op_bytes) > vmem_budget and tk > 128:
        tk = _choose_tile(Bp, tk // 2, 128)     # shrink the key tile before the query tile
    while _vmem_estimate(tq, tk, D, op_bytes) > vmem_budget and tq > 8:
        tq = _choose_tile(Bp, max(tq // 2, 8), 8)

    def key_spec(shape, index_map):
        # Optional deeper buffering for the streamed key operands if key DMA is still exposed.
        if key_buffers != 2:
            return pl.BlockSpec(shape, index_map, pipeline_mode=pl.Buffered(key_buffers))
        return pl.BlockSpec(shape, index_map)

    kernel = functools.partial(_contrastive_tile_kernel,
                               num_valid_rows=B, num_padded_cols=pad)

    out = pl.pallas_call(
        kernel,
        out_shape=jax.ShapeDtypeStruct((Bp, 2), jnp.float32),
        grid_spec=pltpu.PrefetchScalarGridSpec(
            num_scalar_prefetch=0,
            grid=(Bp // tq, Bp // tk),
            in_specs=[
                pl.BlockSpec((tq, 1), lambda qi, ki: (qi, 0)),    # query labels (column)
                key_spec((1, tk), lambda qi, ki: (0, ki)),        # key labels (lane-dense row)
                pl.BlockSpec((tq, D), lambda qi, ki: (qi, 0)),    # query tile (1/T folded in)
                key_spec((tk, D), lambda qi, ki: (ki, 0)),        # key tile (streamed)
            ],
            out_specs=pl.BlockSpec((tq, 2), lambda qi, ki: (qi, 0)),   # [loss*valid, valid]
            scratch_shapes=[pltpu.VMEM((tq, 1), jnp.float32),     # running row max
                            pltpu.VMEM((tq, 1), jnp.float32),     # running all-sum
                            pltpu.VMEM((tq, 1), jnp.float32)],    # running pos-sum
        ),
        compiler_params=pltpu.CompilerParams(
            dimension_semantics=("parallel", "arbitrary"),
            vmem_limit_bytes=int(vmem_budget),
        ),
    )(lab_col, lab_row, q_op, k_op)

    # Tiny final reduction (mean over real rows that have positives) done in XLA.
    loss_rows = out[:B, 0]                      # already multiplied by `valid` in-kernel
    valid_rows = out[:B, 1]
    num_valid = jnp.sum(valid_rows)
    return jnp.where(num_valid > 0,
                     jnp.sum(loss_rows) / jnp.maximum(num_valid, 1.0),
                     jnp.float32(0.0))


def _reference_loss(embeddings, labels, temperature=0.1):
    """Pure-JAX reference mirroring the PyTorch forward (for sanity check)."""
    x = embeddings.astype(jnp.float32)
    x = x / jnp.maximum(jnp.linalg.norm(x, axis=1, keepdims=True), 1e-12)
    sim = jnp.matmul(x, x.T, precision=jax.lax.Precision.HIGHEST) / temperature
    B = x.shape[0]
    lab = labels.reshape(-1, 1)
    mask = (lab == lab.T).astype(jnp.float32) - jnp.eye(B, dtype=jnp.float32)
    exp_sim = jnp.exp(sim - jnp.max(sim, axis=1, keepdims=True))
    pos_sum = jnp.maximum(jnp.sum(exp_sim * mask, axis=1), 1e-8)
    all_sum = jnp.maximum(jnp.sum(exp_sim, axis=1) - jnp.diag(exp_sim), 1e-8)
    loss = -jnp.log(pos_sum / all_sum)
    valid = (pos_sum > 1e-8).astype(jnp.float32)
    nv = jnp.sum(valid)
    return jnp.where(nv > 0, jnp.sum(loss * valid) / jnp.maximum(nv, 1.0), 0.0)


if __name__ == "__main__":
    key = jax.random.PRNGKey(0)
    k_emb, k_lab, k_emb2, k_lab2 = jax.random.split(key, 4)

    # Aligned batch, multi-tile grid: exercises online accumulation across key tiles.
    B, D = 256, 64
    embeddings = jax.random.normal(k_emb, (B, D), dtype=jnp.float32)
    labels = jax.random.randint(k_lab, (B,), 0, 4, dtype=jnp.int32)   # repeats => positives exist
    ref = _reference_loss(embeddings, labels, temperature=0.1)

    # f32-operand verification path (4 query tiles x 2 key tiles).
    loss_f32 = stable_contrastive_loss(embeddings, labels, temperature=0.1,
                                       block_q=64, block_k=128, matmul_dtype=jnp.float32)
    jax.block_until_ready(loss_f32)
    assert jnp.allclose(loss_f32, ref, atol=1e-4, rtol=1e-4), (loss_f32, ref)

    # Default fast path: bf16 MXU operands / f32 accumulation, default tiling
    # (query axis automatically split so the parallel axis has >=2 tiles).
    loss_bf16 = stable_contrastive_loss(embeddings, labels, temperature=0.1)
    jax.block_until_ready(loss_bf16)
    assert jnp.allclose(loss_bf16, ref, atol=5e-2, rtol=5e-2), (loss_bf16, ref)

    # Non-aligned batch: wrapper pads to 256, padded key columns masked exactly in-kernel.
    B2 = 200
    emb2 = jax.random.normal(k_emb2, (B2, D), dtype=jnp.float32)
    lab2 = jax.random.randint(k_lab2, (B2,), 0, 4, dtype=jnp.int32)
    ref2 = _reference_loss(emb2, lab2, temperature=0.1)
    loss_pad = stable_contrastive_loss(emb2, lab2, temperature=0.1,
                                       block_q=64, block_k=128, matmul_dtype=jnp.float32)
    jax.block_until_ready(loss_pad)
    assert jnp.allclose(loss_pad, ref2, atol=1e-4, rtol=1e-4), (loss_pad, ref2)

    print("KERNEL_OK")
</pallas_src>

<mosaic_0001>
module attributes {stable_mosaic.version = 11 : i64} {
  func.func @_contrastive_tile_kernel(%arg0: i32, %arg1: i32, %arg2: memref<64x1xi32, #tpu.memory_space<vmem>>, %arg3: memref<1x128xi32, #tpu.memory_space<vmem>>, %arg4: memref<64x64xf32, #tpu.memory_space<vmem>>, %arg5: memref<128x64xf32, #tpu.memory_space<vmem>>, %arg6: memref<64x2xf32, #tpu.memory_space<vmem>>, %arg7: memref<64x1xf32, #tpu.memory_space<vmem>>, %arg8: memref<64x1xf32, #tpu.memory_space<vmem>>, %arg9: memref<64x1xf32, #tpu.memory_space<vmem>>) attributes {dimension_semantics = [#tpu.dimension_semantics<parallel>, #tpu.dimension_semantics<arbitrary>], iteration_bounds = array<i64: 4, 2>, scalar_prefetch = 0 : i64, scratch_operands = 3 : i64, tpu.core_type = #tpu.core_type<tc>, window_params = [{transform_indices = @transform_0, window_bounds = array<i64: 64, 1>}, {transform_indices = @transform_1, window_bounds = array<i64: 1, 128>}, {transform_indices = @transform_2, window_bounds = array<i64: 64, 64>}, {transform_indices = @transform_3, window_bounds = array<i64: 128, 64>}, {transform_indices = @transform_4, window_bounds = array<i64: 64, 2>}]} {
    %c0_i32 = arith.constant 0 : i32
    %0 = arith.cmpi eq, %arg1, %c0_i32 : i32
    %1 = arith.extui %0 : i1 to i32
    %c0_i32_0 = arith.constant 0 : i32
    %2 = arith.cmpi ne, %1, %c0_i32_0 : i32
    scf.if %2 {
      %cst_28 = arith.constant 0xFF800000 : f32
      %48 = vector.broadcast %cst_28 : f32 to vector<64x1xf32>
      %c0_29 = arith.constant 0 : index
      %c0_30 = arith.constant 0 : index
      %49 = vector.load %arg7[%c0_29, %c0_30] : memref<64x1xf32, #tpu.memory_space<vmem>>, vector<64x1xf32>
      tpu.vector_store %arg7[%c0_29, %c0_30], %48 {strides = array<i32>} : memref<64x1xf32, #tpu.memory_space<vmem>>, vector<64x1xf32>,
      %cst_31 = arith.constant 0.000000e+00 : f32
      %50 = vector.broadcast %cst_31 : f32 to vector<64x1xf32>
      %c0_32 = arith.constant 0 : index
      %c0_33 = arith.constant 0 : index
      %51 = vector.load %arg8[%c0_32, %c0_33] : memref<64x1xf32, #tpu.memory_space<vmem>>, vector<64x1xf32>
      tpu.vector_store %arg8[%c0_32, %c0_33], %50 {strides = array<i32>} : memref<64x1xf32, #tpu.memory_space<vmem>>, vector<64x1xf32>,
      %cst_34 = arith.constant 0.000000e+00 : f32
      %52 = vector.broadcast %cst_34 : f32 to vector<64x1xf32>
      %c0_35 = arith.constant 0 : index
      %c0_36 = arith.constant 0 : index
      %53 = vector.load %arg9[%c0_35, %c0_36] : memref<64x1xf32, #tpu.memory_space<vmem>>, vector<64x1xf32>
      tpu.vector_store %arg9[%c0_35, %c0_36], %52 {strides = array<i32>} : memref<64x1xf32, #tpu.memory_space<vmem>>, vector<64x1xf32>,
    } else {
    }
    %c0 = arith.constant 0 : index
    %c0_1 = arith.constant 0 : index
    %3 = vector.load %arg4[%c0, %c0_1] : memref<64x64xf32, #tpu.memory_space<vmem>>, vector<64x64xf32>
    %c0_2 = arith.constant 0 : index
    %c0_3 = arith.constant 0 : index
    %4 = vector.load %arg5[%c0_2, %c0_3] : memref<128x64xf32, #tpu.memory_space<vmem>>, vector<128x64xf32>
    %cst = arith.constant dense<0.000000e+00> : vector<64x128xf32>
    %5 = tpu.matmul %3, %4, %cst {dimension_numbers = #tpu.dot_dimension_numbers<[1], [1], [0], [0], [0, 0, 1, 0], [], []>} : vector<64x64xf32>, vector<128x64xf32>, vector<64x128xf32> -> vector<64x128xf32>
    %c0_4 = arith.constant 0 : index
    %c0_5 = arith.constant 0 : index
    %6 = vector.load %arg7[%c0_4, %c0_5] : memref<64x1xf32, #tpu.memory_space<vmem>>, vector<64x1xf32>
    %cst_6 = arith.constant dense<0xFF800000> : vector<64xf32>
    %7 = vector.multi_reduction <maximumf>, %5, %cst_6 [1] : vector<64x128xf32> to vector<64xf32>
    %8 = vector.shape_cast %7 : vector<64xf32> to vector<64x1xf32>
    %9 = arith.maximumf %6, %8 : vector<64x1xf32>
    %10 = arith.subf %6, %9 : vector<64x1xf32>
    %11 = math.exp %10 : vector<64x1xf32>
    %12 = vector.broadcast %9 : vector<64x1xf32> to vector<64x128xf32>
    %13 = arith.subf %5, %12 : vector<64x128xf32>
    %14 = math.exp %13 : vector<64x128xf32>
    %c64_i32 = arith.constant 64 : i32
    %15 = arith.muli %arg0, %c64_i32 : i32
    %c128_i32 = arith.constant 128 : i32
    %16 = arith.muli %arg1, %c128_i32 : i32
    %c128_i32_7 = arith.constant 128 : i32
    %17 = arith.addi %16, %c128_i32_7 : i32
    %18 = arith.cmpi slt, %15, %17 : i32
    %c64_i32_8 = arith.constant 64 : i32
    %19 = arith.addi %15, %c64_i32_8 : i32
    %20 = arith.cmpi slt, %16, %19 : i32
    %21 = arith.andi %18, %20 : i1
    %22 = arith.extui %21 : i1 to i32
    %c0_i32_9 = arith.constant 0 : i32
    %23 = arith.cmpi ne, %22, %c0_i32_9 : i32
    %24 = scf.if %23 -> (vector<64x128xf32>) {
      %48 = tpu.iota {dimensions = array<i32: 0>} : vector<64x128xi32>
      %49 = vector.broadcast %15 : i32 to vector<64x128xi32>
      %50 = arith.addi %49, %48 : vector<64x128xi32>
      %51 = tpu.iota {dimensions = array<i32: 1>} : vector<64x128xi32>
      %52 = vector.broadcast %16 : i32 to vector<64x128xi32>
      %53 = arith.addi %52, %51 : vector<64x128xi32>
      %54 = arith.cmpi ne, %50, %53 : vector<64x128xi32>
      %cst_28 = arith.constant 0.000000e+00 : f32
      %55 = vector.broadcast %cst_28 : f32 to vector<64x128xf32>
      %56 = arith.select %54, %14, %55 : vector<64x128xi1>, vector<64x128xf32>
      scf.yield %56 : vector<64x128xf32>
    } else {
      scf.yield %14 : vector<64x128xf32>
    }
    %c0_10 = arith.constant 0 : index
    %c0_11 = arith.constant 0 : index
    %25 = vector.load %arg2[%c0_10, %c0_11] : memref<64x1xi32, #tpu.memory_space<vmem>>, vector<64x1xi32>
    %c0_12 = arith.constant 0 : index
    %c0_13 = arith.constant 0 : index
    %26 = vector.load %arg3[%c0_12, %c0_13] : memref<1x128xi32, #tpu.memory_space<vmem>>, vector<1x128xi32>
    %27 = vector.broadcast %25 : vector<64x1xi32> to vector<64x128xi32>
    %28 = vector.broadcast %26 : vector<1x128xi32> to vector<64x128xi32>
    %29 = arith.cmpi eq, %27, %28 : vector<64x128xi32>
    %cst_14 = arith.constant 0.000000e+00 : f32
    %30 = vector.broadcast %cst_14 : f32 to vector<64x128xf32>
    %31 = arith.select %29, %24, %30 : vector<64x128xi1>, vector<64x128xf32>
    %c0_15 = arith.constant 0 : index
    %c0_16 = arith.constant 0 : index
    %32 = vector.load %arg8[%c0_15, %c0_16] : memref<64x1xf32, #tpu.memory_space<vmem>>, vector<64x1xf32>
    %33 = arith.mulf %11, %32 : vector<64x1xf32>
    %cst_17 = arith.constant dense<0.000000e+00> : vector<64xf32>
    %34 = vector.multi_reduction <add>, %24, %cst_17 [1] : vector<64x128xf32> to vector<64xf32>
    %35 = vector.shape_cast %34 : vector<64xf32> to vector<64x1xf32>
    %36 = arith.addf %33, %35 : vector<64x1xf32>
    %c0_18 = arith.constant 0 : index
    %c0_19 = arith.constant 0 : index
    %37 = vector.load %arg8[%c0_18, %c0_19] : memref<64x1xf32, #tpu.memory_space<vmem>>, vector<64x1xf32>
    tpu.vector_store %arg8[%c0_18, %c0_19], %36 {strides = array<i32>} : memref<64x1xf32, #tpu.memory_space<vmem>>, vector<64x1xf32>,
    %c0_20 = arith.constant 0 : index
    %c0_21 = arith.constant 0 : index
    %38 = vector.load %arg9[%c0_20, %c0_21] : memref<64x1xf32, #tpu.memory_space<vmem>>, vector<64x1xf32>
    %39 = arith.mulf %11, %38 : vector<64x1xf32>
    %cst_22 = arith.constant dense<0.000000e+00> : vector<64xf32>
    %40 = vector.multi_reduction <add>, %31, %cst_22 [1] : vector<64x128xf32> to vector<64xf32>
    %41 = vector.shape_cast %40 : vector<64xf32> to vector<64x1xf32>
    %42 = arith.addf %39, %41 : vector<64x1xf32>
    %c0_23 = arith.constant 0 : index
    %c0_24 = arith.constant 0 : index
    %43 = vector.load %arg9[%c0_23, %c0_24] : memref<64x1xf32, #tpu.memory_space<vmem>>, vector<64x1xf32>
    tpu.vector_store %arg9[%c0_23, %c0_24], %42 {strides = array<i32>} : memref<64x1xf32, #tpu.memory_space<vmem>>, vector<64x1xf32>,
    %c0_25 = arith.constant 0 : index
    %c0_26 = arith.constant 0 : index
    %44 = vector.load %arg7[%c0_25, %c0_26] : memref<64x1xf32, #tpu.memory_space<vmem>>, vector<64x1xf32>
    tpu.vector_store %arg7[%c0_25, %c0_26], %9 {strides = array<i32>} : memref<64x1xf32, #tpu.memory_space<vmem>>, vector<64x1xf32>,
    %c1_i32 = arith.constant 1 : i32
    %45 = arith.cmpi eq, %arg1, %c1_i32 : i32
    %46 = arith.extui %45 : i1 to i32
    %c0_i32_27 = arith.constant 0 : i32
    %47 = arith.cmpi ne, %46, %c0_i32_27 : i32
    scf.if %47 {
      %c0_28 = arith.constant 0 : index
      %c0_29 = arith.constant 0 : index
      %48 = vector.load %arg9[%c0_28, %c0_29] : memref<64x1xf32, #tpu.memory_space<vmem>>, vector<64x1xf32>
      %c0_30 = arith.constant 0 : index
      %c0_31 = arith.constant 0 : index
      %49 = vector.load %arg8[%c0_30, %c0_31] : memref<64x1xf32, #tpu.memory_space<vmem>>, vector<64x1xf32>
      %cst_32 = arith.constant 9.99999993E-9 : f32
      %50 = vector.broadcast %cst_32 : f32 to vector<64x1xf32>
      %51 = arith.maximumf %49, %50 : vector<64x1xf32>
      %52 = math.log %51 : vector<64x1xf32>
      %cst_33 = arith.constant 9.99999993E-9 : f32
      %53 = vector.broadcast %cst_33 : f32 to vector<64x1xf32>
      %54 = arith.maximumf %48, %53 : vector<64x1xf32>
      %55 = math.log %54 : vector<64x1xf32>
      %56 = arith.subf %52, %55 : vector<64x1xf32>
      %cst_34 = arith.constant 9.99999993E-9 : f32
      %57 = vector.broadcast %cst_34 : f32 to vector<64x1xf32>
      %58 = arith.cmpf ogt, %48, %57 : vector<64x1xf32>
      %59 = arith.extui %58 : vector<64x1xi1> to vector<64x1xi32>
      %60 = arith.sitofp %59 : vector<64x1xi32> to vector<64x1xf32>
      %61 = tpu.iota {dimensions = array<i32: 1>} : vector<64x2xi32>
      %c0_i32_35 = arith.constant 0 : i32
      %62 = vector.broadcast %c0_i32_35 : i32 to vector<64x2xi32>
      %63 = arith.cmpi eq, %61, %62 : vector<64x2xi32>
      %64 = arith.mulf %56, %60 : vector<64x1xf32>
      %65 = vector.shape_cast %64 : vector<64x1xf32> to vector<64x1xf32>
      %66 = vector.broadcast %65 : vector<64x1xf32> to vector<64x2xf32>
      %67 = vector.shape_cast %60 : vector<64x1xf32> to vector<64x1xf32>
      %68 = vector.broadcast %67 : vector<64x1xf32> to vector<64x2xf32>
      %69 = arith.select %63, %66, %68 : vector<64x2xi1>, vector<64x2xf32>
      %c0_36 = arith.constant 0 : index
      %c0_37 = arith.constant 0 : index
      %70 = vector.load %arg6[%c0_36, %c0_37] : memref<64x2xf32, #tpu.memory_space<vmem>>, vector<64x2xf32>
      tpu.vector_store %arg6[%c0_36, %c0_37], %69 {strides = array<i32>} : memref<64x2xf32, #tpu.memory_space<vmem>>, vector<64x2xf32>,
    } else {
    }
    return
  }
  func.func @transform_0(%arg0: i32, %arg1: i32) -> (i32, i32) {
    %c0_i32 = arith.constant 0 : i32
    %c0_i32_0 = arith.constant 0 : i32
    return %arg0, %c0_i32 : i32, i32
  }
  func.func @transform_1(%arg0: i32, %arg1: i32) -> (i32, i32) {
    %c0_i32 = arith.constant 0 : i32
    %c0_i32_0 = arith.constant 0 : i32
    return %c0_i32, %arg1 : i32, i32
  }
  func.func @transform_2(%arg0: i32, %arg1: i32) -> (i32, i32) {
    %c0_i32 = arith.constant 0 : i32
    %c0_i32_0 = arith.constant 0 : i32
    return %arg0, %c0_i32 : i32, i32
  }
  func.func @transform_3(%arg0: i32, %arg1: i32) -> (i32, i32) {
    %c0_i32 = arith.constant 0 : i32
    %c0_i32_0 = arith.constant 0 : i32
    return %arg1, %c0_i32 : i32, i32
  }
  func.func @transform_4(%arg0: i32, %arg1: i32) -> (i32, i32) {
    %c0_i32 = arith.constant 0 : i32
    %c0_i32_0 = arith.constant 0 : i32
    return %arg0, %c0_i32 : i32, i32
  }
}

</mosaic_0001>

<bundles_post_ra>
// kernel: tpu_custom_call.1
= control target key start
LH: loop header
LB: loop body
LE: loop exit
PB: predicated region body
PF: predicated region fallthrough
CT: control target
= control target key end

     0   :  { %s1467_s15 = smov 0   ;;  %s1469_s16 = smov 0   ;;  %s2062_s0 = inlined_call_operand.vmem [shape: s32[256,1], index: 0, kind: input, shape index: {}]   ;;  %s2063_s1 = inlined_call_operand.vmem [shape: s32[1,256], index: 1, kind: input, shape index: {}]   ;;  %s2064_s2 = inlined_call_operand.vmem [shape: f32[256,64], index: 2, kind: input, shape index: {}]   ;;  %s2065_s3 = inlined_call_operand.vmem [shape: f32[256,64], index: 3, kind: input, shape index: {}]   ;;  %s2066_s4 = inlined_call_operand.vmem [shape: f32[256,2], index: 4, kind: output, shape index: {}]  }
   0x1   :  { %s1471_s17 = smov 0   ;;  %s1473_s18 = smov 0  }
   0x2   :  { %s1475_s19 = smov 0  }
   0x3 LB: > { %s23_s20 = sadd.s32 1, %s1427_s17  ;;  %s26_s21 = sadd.s32 1, %s1431_s18  ;;  %s1435_s19 = sphi %s1475_s19, %s14_s19   ;;  %s1431_s18 = sphi %s1473_s18, %s2076_s18   ;;  %s1427_s17 = sphi %s1471_s17, %s2075_s17   ;;  %s1423_s16 = sphi %s1469_s16, %s2074_s16   ;;  %s1419_s15 = sphi %s1467_s15, %s2073_s15  }
   0x4   : > { %p24_p0 = scmp.ge.s32.totalorder %s23_s20, 2  ;;  %p1093_p1 = scmp.ge.s32.totalorder %s1435_s19, 1 }
   0x5   : > { %p205_p2 = scmp.lt.s32.totalorder %s1435_s19, 9 }
   0x6   : > { %s2078_s20 = smov (%p24_p0, %s23_s20), 0  ;;  %s2080_s21 = smov (!%p24_p0, %s26_s21), %s1431_s18 }
   0x7   : > { %p206_p3 = pnand %p1093_p1, %p205_p2  ;;  %p28_p4 = scmp.ge.s32.totalorder %s2080_s21, 4 }
   0x8   : > { %s1094_s22 = sshll.u32 (!%p206_p3), %s1423_s16, 3  ;;  %p250_p5 = scmp.lt.s32.totalorder (!%p206_p3), %s1419_s15, 1 }
   0x9   : > { %s2082_s21 = smov (%p28_p4, %s2080_s21), 0  ;;  %209 = sbr.rel (%p206_p3) target bundleno = 812 (0x32c), region = 36 }
   0xa   : > { %p245_p6 = scmp.lt.s32.totalorder (!%p206_p3), %s1094_s22, 31  ;;  %s1098_s23 = sshll.u32 (!%p206_p3), %s1419_s15, 4 }
   0xb   : > { %p260_p7 = scmp.lt.s32.totalorder (!%p206_p3), %s1098_s23, 31  ;;  %p1102_p8 = scmp.ne.s32.totalorder (!%p206_p3), %s1419_s15, 0 }
   0xe   : > { %s1505_s24 = scalar_select %p250_p5, %s1419_s15, 1 }
   0xf   : > { %s2084_s22 = smov (!%p245_p6, %s1094_s22), 31  ;;  %s2086_s23 = smov (!%p260_p7, %s1098_s23), 31 }
  0x10   : > { %s252_s27 = scalar_lea.vmem %s2063_s1, %s1505_s24  ;;  %s1095_s28 = sshll.u32 %s2084_s22, 3 }
  0x11   : > { %s1514_s5 = scalar_lea.vmem %s2062_s0, %s1095_s28  ;;  %s1519_s8 = scalar_lea.vmem %s2064_s2, %s1095_s28 }
  0x12   : > { %s1524_s11 = scalar_lea.vmem %s2066_s4, %s1095_s28  ;;  %s1099_s12 = sshll.u32 %s2086_s23, 3 }
  0x13   : > { %s1529_s22 = scalar_lea.vmem %s2065_s3, %s1099_s12  ;;  %274 = sbr.rel (%p1102_p8) target bundleno = 49 (0x31), region = 40 }
  0x18   : > { %vm275_vm0 = vcmask 7168   ;;  %v1437_v0 = vmov -inf   ;;  %v1438_v1 = vmov 0.0  }
  0x19   : > { %276 = vst.msk [vmem:[#allocation2] sm:$0xff] %vm275_vm0, %v1437_v0 }
  0x1a   : > { %277 = vst.msk [vmem:[#allocation2 + $0x8] sm:$0xff] %vm275_vm0, %v1437_v0 }
  0x1b   : > { %278 = vst.msk [vmem:[#allocation2 + $0x10] sm:$0xff] %vm275_vm0, %v1437_v0 }
  0x1c   : > { %279 = vst.msk [vmem:[#allocation2 + $0x18] sm:$0xff] %vm275_vm0, %v1437_v0 }
  0x1d   : > { %280 = vst.msk [vmem:[#allocation2 + $0x20] sm:$0xff] %vm275_vm0, %v1437_v0 }
  0x1e   : > { %281 = vst.msk [vmem:[#allocation2 + $0x28] sm:$0xff] %vm275_vm0, %v1437_v0 }
  0x1f   : > { %282 = vst.msk [vmem:[#allocation2 + $0x30] sm:$0xff] %vm275_vm0, %v1437_v0 }
  0x20   : > { %283 = vst.msk [vmem:[#allocation2 + $0x38] sm:$0xff] %vm275_vm0, %v1437_v0 }
  0x21   : > { %284 = vst.msk [vmem:[#allocation3] sm:$0xff] %vm275_vm0, %v1438_v1 }
  0x22   : > { %285 = vst.msk [vmem:[#allocation3 + $0x8] sm:$0xff] %vm275_vm0, %v1438_v1 }
  0x23   : > { %286 = vst.msk [vmem:[#allocation3 + $0x10] sm:$0xff] %vm275_vm0, %v1438_v1 }
  0x24   : > { %287 = vst.msk [vmem:[#allocation3 + $0x18] sm:$0xff] %vm275_vm0, %v1438_v1 }
  0x25   : > { %288 = vst.msk [vmem:[#allocation3 + $0x20] sm:$0xff] %vm275_vm0, %v1438_v1 }
  0x26   : > { %289 = vst.msk [vmem:[#allocation3 + $0x28] sm:$0xff] %vm275_vm0, %v1438_v1 }
  0x27   : > { %290 = vst.msk [vmem:[#allocation3 + $0x30] sm:$0xff] %vm275_vm0, %v1438_v1 }
  0x28   : > { %291 = vst.msk [vmem:[#allocation3 + $0x38] sm:$0xff] %vm275_vm0, %v1438_v1 }
  0x29   : > { %292 = vst.msk [vmem:[#allocation4] sm:$0xff] %vm275_vm0, %v1438_v1 }
  0x2a   : > { %293 = vst.msk [vmem:[#allocation4 + $0x8] sm:$0xff] %vm275_vm0, %v1438_v1 }
  0x2b   : > { %294 = vst.msk [vmem:[#allocation4 + $0x10] sm:$0xff] %vm275_vm0, %v1438_v1 }
  0x2c   : > { %295 = vst.msk [vmem:[#allocation4 + $0x18] sm:$0xff] %vm275_vm0, %v1438_v1 }
  0x2d   : > { %296 = vst.msk [vmem:[#allocation4 + $0x20] sm:$0xff] %vm275_vm0, %v1438_v1 }
  0x2e   : > { %297 = vst.msk [vmem:[#allocation4 + $0x28] sm:$0xff] %vm275_vm0, %v1438_v1 }
  0x2f   : > { %298 = vst.msk [vmem:[#allocation4 + $0x30] sm:$0xff] %vm275_vm0, %v1438_v1 }
  0x30   : > { %299 = vst.msk [vmem:[#allocation4 + $0x38] sm:$0xff] %vm275_vm0, %v1438_v1 }
  0x31 PF: > { %v323_v2 = vld [vmem:[%s1529_s22 + $0x78] sm:$0xff]  ;;  %vm324_vm1 = vcmask 523264   ;;  %v322_v3 = vld [vmem:[%s1529_s22 + $0x70] sm:$0xff]  ;;  %v321_v4 = vld [vmem:[%s1529_s22 + $0x68] sm:$0xff]  ;;  %v1439_v15 = vmov 0   ;;  %s1685_s23 = sshll.u32 %s1423_s16, 6 }
  0x32   : > { %1103 = vmatpush.xpose.msk.msra.mxu0 %vm324_vm1, %v323_v2  ;;  %1140 = vmatpush.xpose.msk.msra.mxu1 %vm324_vm1, %v323_v2  ;;  %v320_v5 = vld [vmem:[%s1529_s22 + $0x60] sm:$0xff]  ;;  %v319_v6 = vld [vmem:[%s1529_s22 + $0x58] sm:$0xff]  ;;  %v318_v7 = vld [vmem:[%s1529_s22 + $0x50] sm:$0xff]  ;;  %s1688_s25 = sshll.u32 %s1419_s15, 7  ;;  %s562_s28 = sadd.s32 64, %s1685_s23  ;;  %vm715_vm2 = vcmask 7168  }
  0x33   : > { %1141 = vmatpush.xpose.msk.msra.mxu2 %vm324_vm1, %v323_v2  ;;  %1142 = vmatpush.xpose.msk.msra.mxu3 %vm324_vm1, %v323_v2  ;;  %v317_v8 = vld [vmem:[%s1529_s22 + $0x48] sm:$0xff]  ;;  %v316_v9 = vld [vmem:[%s1529_s22 + $0x40] sm:$0xff]  ;;  %v315_v10 = vld [vmem:[%s1529_s22 + $0x38] sm:$0xff]  ;;  %s560_s26 = sadd.s32 128, %s1688_s25  ;;  %p1698_p10 = scmp.lt.s32.totalorder %s1688_s25, %s562_s28 }
  0x34   : > { %v314_v11 = vld [vmem:[%s1529_s22 + $0x30] sm:$0xff]  ;;  %v313_v12 = vld [vmem:[%s1529_s22 + $0x28] sm:$0xff]  ;;  %v312_v13 = vld [vmem:[%s1529_s22 + $0x20] sm:$0xff]  ;;  %1306 = vset.pattern.permute.xlu0 %v1439_v15  ;;  %1307 = vset.pattern.permute.xlu2 %v1439_v15  ;;  %p1693_p9 = scmp.lt.s32.totalorder %s1685_s23, %s560_s26  ;;  %p1129_p12 = scmp.ne.s32.totalorder %s1419_s15, 1 }
  0x35   : > { %v625_v14 = vld [vmem:[%s1514_s5] sm:$0xff]  ;;  %v626_v16 = vld [vmem:[%s1514_s5 + $0x8] sm:$0xff]  ;;  %v627_v17 = vld [vmem:[%s1514_s5 + $0x10] sm:$0xff]  ;;  %1308 = vset.pattern.permute.xlu1 %v1439_v15 }
  0x36   : > { %1104 = vmatpush.xpose.msk.msra.mxu0 %vm324_vm1, %v322_v3  ;;  %1143 = vmatpush.xpose.msk.msra.mxu1 %vm324_vm1, %v322_v3  ;;  %v311_v18 = vld [vmem:[%s1529_s22 + $0x18] sm:$0xff]  ;;  %v629_v20 = vld [vmem:[%s1514_s5 + $0x20] sm:$0xff]  ;;  %v310_v21 = vld [vmem:[%s1529_s22 + $0x10] sm:$0xff]  ;;  %p564_p11 = pnand %p1698_p10, %p1693_p9 }
  0x37   : > { %1144 = vmatpush.xpose.msk.msra.mxu2 %vm324_vm1, %v322_v3  ;;  %1145 = vmatpush.xpose.msk.msra.mxu3 %vm324_vm1, %v322_v3  ;;  %v628_v19 = vld [vmem:[%s1514_s5 + $0x18] sm:$0xff]  ;;  %v630_v22 = vld [vmem:[%s1514_s5 + $0x28] sm:$0xff]  ;;  %v631_v24 = vld [vmem:[%s1514_s5 + $0x30] sm:$0xff] }
  0x38   : > { %635 = vperm.xlu0 %1306, %v625_v14   ;;  %638 = vperm.xlu2 %1307, %v626_v16   ;;  %v309_v23 = vld [vmem:[%s1529_s22 + $0x8] sm:$0xff]  ;;  %v632_v25 = vld [vmem:[%s1514_s5 + $0x38] sm:$0xff]  ;;  %v308_v26 = vld [vmem:[%s1529_s22] sm:$0xff]  ;;  %s1253_s16 = scalar_select %p564_p11, 0, 1 }
  0x39   : > { %641 = vperm.xlu1 %1308, %v627_v17   ;;  %v300_v27 = vld [vmem:[%s1519_s8] sm:$0xff]  ;;  %v302_v28 = vld [vmem:[%s1519_s8 + $0x10] sm:$0xff]  ;;  %v303_v31 = vld [vmem:[%s1519_s8 + $0x18] sm:$0xff]  ;;  %s1221_s5 = scalar_select %p564_p11, 1, 0 }
  0x3a   : > { %1105 = vmatpush.xpose.msk.msra.mxu0 %vm324_vm1, %v321_v4  ;;  %1146 = vmatpush.xpose.msk.msra.mxu1 %vm324_vm1, %v321_v4  ;;  %v304_v29 = vld [vmem:[%s1519_s8 + $0x20] sm:$0xff]  ;;  %v306_v30 = vld [vmem:[%s1519_s8 + $0x30] sm:$0xff]  ;;  %v301_v32 = vld [vmem:[%s1519_s8 + $0x8] sm:$0xff] }
  0x3b   : > { %1147 = vmatpush.xpose.msk.msra.mxu2 %vm324_vm1, %v321_v4  ;;  %1148 = vmatpush.xpose.msk.msra.mxu3 %vm324_vm1, %v321_v4  ;;  %v305_v33 = vld [vmem:[%s1519_s8 + $0x28] sm:$0xff]  ;;  %v307_v34 = vld [vmem:[%s1519_s8 + $0x38] sm:$0xff]  ;;  %v1720_v50 = vld [vmem:[#allocation2 + $0x10] sm:$0xff] }
  0x3c   : > { %v1722_v51 = vld [vmem:[#allocation2] sm:$0xff]  ;;  %v1744_v60 = vld [vmem:[#allocation2 + $0x30] sm:$0xff]  ;;  %v1746_v61 = vld [vmem:[#allocation2 + $0x18] sm:$0xff] }
  0x3d   : > { %v1742_v59 = vld [vmem:[#allocation2 + $0x20] sm:$0xff] }
  0x3e   : > { %1106 = vmatpush.xpose.msk.msra.mxu0 %vm324_vm1, %v320_v5  ;;  %1149 = vmatpush.xpose.msk.msra.mxu1 %vm324_vm1, %v320_v5 }
  0x3f   : > { %1150 = vmatpush.xpose.msk.msra.mxu2 %vm324_vm1, %v320_v5  ;;  %1151 = vmatpush.xpose.msk.msra.mxu3 %vm324_vm1, %v320_v5 }
  0x40   : > { %644 = vperm.xlu0 %1306, %v628_v19   ;;  %647 = vperm.xlu2 %1307, %v629_v20   ;;  %v568_v19 = vlaneseq }
  0x41   : > { %650 = vperm.xlu1 %1308, %v630_v22  }
  0x42   : > { %1107 = vmatpush.xpose.msk.msra.mxu0 %vm324_vm1, %v319_v6  ;;  %1152 = vmatpush.xpose.msk.msra.mxu1 %vm324_vm1, %v319_v6  ;;  %v1803_v22 = vshrl.u32 %v568_v19, 7 }
  0x43   : > { %1153 = vmatpush.xpose.msk.msra.mxu2 %vm324_vm1, %v319_v6  ;;  %1154 = vmatpush.xpose.msk.msra.mxu3 %vm324_vm1, %v319_v6 }
  0x46   : > { %1108 = vmatpush.xpose.msk.msra.mxu0 %vm324_vm1, %v318_v7  ;;  %1155 = vmatpush.xpose.msk.msra.mxu1 %vm324_vm1, %v318_v7 }
  0x47   : > { %1156 = vmatpush.xpose.msk.msra.mxu2 %vm324_vm1, %v318_v7  ;;  %1157 = vmatpush.xpose.msk.msra.mxu3 %vm324_vm1, %v318_v7  ;;  %v1770_v7 = vld [vmem:[#allocation2 + $0x28] sm:$0xff] }
  0x48   : > { %653 = vperm.xlu0 %1306, %v631_v24   ;;  %656 = vperm.xlu2 %1307, %v632_v25   ;;  %v1808_v24 = vstv %s1685_s23  ;;  %v588_v25 = vstv %s1688_s25 }
  0x4a   : > { %1109 = vmatpush.xpose.msk.msra.mxu0 %vm324_vm1, %v317_v8  ;;  %1158 = vmatpush.xpose.msk.msra.mxu1 %vm324_vm1, %v317_v8 }
  0x4b   : > { %1159 = vmatpush.xpose.msk.msra.mxu2 %vm324_vm1, %v317_v8  ;;  %1160 = vmatpush.xpose.msk.msra.mxu3 %vm324_vm1, %v317_v8  ;;  %v1772_v8 = vld [vmem:[#allocation2 + $0x8] sm:$0xff] }
  0x4e   : > { %1110 = vmatpush.xpose.msk.msra.mxu0 %vm324_vm1, %v316_v9  ;;  %1161 = vmatpush.xpose.msk.msra.mxu1 %vm324_vm1, %v316_v9 }
  0x4f   : > { %1162 = vmatpush.xpose.msk.msra.mxu2 %vm324_vm1, %v316_v9  ;;  %1163 = vmatpush.xpose.msk.msra.mxu3 %vm324_vm1, %v316_v9  ;;  %v1774_v9 = vld [vmem:[#allocation2 + $0x38] sm:$0xff] }
  0x52   : > { %1111 = vmatpush.xpose.msk.msra.mxu0 %vm324_vm1, %v315_v10  ;;  %1164 = vmatpush.xpose.msk.msra.mxu1 %vm324_vm1, %v315_v10 }
  0x53   : > { %1165 = vmatpush.xpose.msk.msra.mxu2 %vm324_vm1, %v315_v10  ;;  %1166 = vmatpush.xpose.msk.msra.mxu3 %vm324_vm1, %v315_v10 }
  0x56   : > { %1112 = vmatpush.xpose.msk.msra.mxu0 %vm324_vm1, %v314_v11  ;;  %1167 = vmatpush.xpose.msk.msra.mxu1 %vm324_vm1, %v314_v11 }
  0x57   : > { %1168 = vmatpush.xpose.msk.msra.mxu2 %vm324_vm1, %v314_v11  ;;  %1169 = vmatpush.xpose.msk.msra.mxu3 %vm324_vm1, %v314_v11 }
  0x5a   : > { %1113 = vmatpush.xpose.msk.msra.mxu0 %vm324_vm1, %v313_v12  ;;  %1170 = vmatpush.xpose.msk.msra.mxu1 %vm324_vm1, %v313_v12 }
  0x5b   : > { %1171 = vmatpush.xpose.msk.msra.mxu2 %vm324_vm1, %v313_v12  ;;  %1172 = vmatpush.xpose.msk.msra.mxu3 %vm324_vm1, %v313_v12 }
  0x5e   : > { %1114 = vmatpush.xpose.msk.msra.mxu0 %vm324_vm1, %v312_v13  ;;  %1173 = vmatpush.xpose.msk.msra.mxu1 %vm324_vm1, %v312_v13 }
  0x5f   : > { %1174 = vmatpush.xpose.msk.msra.mxu2 %vm324_vm1, %v312_v13  ;;  %1175 = vmatpush.xpose.msk.msra.mxu3 %vm324_vm1, %v312_v13 }
  0x62   : > { %1115 = vmatpush.xpose.msk.msra.mxu0 %vm324_vm1, %v311_v18  ;;  %1176 = vmatpush.xpose.msk.msra.mxu1 %vm324_vm1, %v311_v18 }
  0x63   : > { %1177 = vmatpush.xpose.msk.msra.mxu2 %vm324_vm1, %v311_v18  ;;  %1178 = vmatpush.xpose.msk.msra.mxu3 %vm324_vm1, %v311_v18 }
  0x66   : > { %1116 = vmatpush.xpose.msk.msra.mxu0 %vm324_vm1, %v310_v21  ;;  %1179 = vmatpush.xpose.msk.msra.mxu1 %vm324_vm1, %v310_v21 }
  0x67   : > { %1180 = vmatpush.xpose.msk.msra.mxu2 %vm324_vm1, %v310_v21  ;;  %1181 = vmatpush.xpose.msk.msra.mxu3 %vm324_vm1, %v310_v21 }
  0x6a   : > { %1117 = vmatpush.xpose.msk.msra.mxu0 %vm324_vm1, %v309_v23  ;;  %1182 = vmatpush.xpose.msk.msra.mxu1 %vm324_vm1, %v309_v23 }
  0x6b   : > { %1183 = vmatpush.xpose.msk.msra.mxu2 %vm324_vm1, %v309_v23  ;;  %1184 = vmatpush.xpose.msk.msra.mxu3 %vm324_vm1, %v309_v23  ;;  %v1805_v23 = vand.u32 127, %v568_v19 }
  0x6e   : > { %1118 = vmatpush.xpose.msk.msra.mxu0 %vm324_vm1, %v308_v26  ;;  %1185 = vmatpush.xpose.msk.msra.mxu1 %vm324_vm1, %v308_v26 }
  0x6f   : > { %1186 = vmatpush.xpose.msk.msra.mxu2 %vm324_vm1, %v308_v26  ;;  %1187 = vmatpush.xpose.msk.msra.mxu3 %vm324_vm1, %v308_v26 }
  0x71   : > { %1119 = vmatmul.msk.f32.vlgmr.msra.gmra.mxu0 %vm324_vm1, %v300_v27  ;;  %1121 = vmatmul.msk.f32.vlgmr.msra.gmra.mxu1 %vm324_vm1, %v302_v28  ;;  %v578_v27 = vadd.s32 %v1808_v24, %v1803_v22  ;;  %v1824_v28 = vadd.s32 %v588_v25, %v1805_v23 }
  0x72   : > { %1123 = vmatmul.msk.f32.vlgmr.msra.gmra.mxu2 %vm324_vm1, %v304_v29  ;;  %1125 = vmatmul.msk.f32.vlgmr.msra.gmra.mxu3 %vm324_vm1, %v306_v30  ;;  %v1190_v29 = vstv %s1253_s16 }
  0x73   : > { %vm590_vm3 = vcmp.ne.s32.totalorder %v578_v27, %v1824_v28  ;;  %vm1829_vm4 = vcmp.ne.s32.totalorder %v1190_v29, 0 }
  0x79   : > { %1122 = vmatmul.msk.f32.gmra.mxu1 %vm324_vm1, %v303_v31  ;;  %1120 = vmatmul.msk.f32.gmra.mxu0 %vm324_vm1, %v301_v32  ;;  %v1222_v31 = vstv %s1221_s5 }
  0x7a   : > { %1124 = vmatmul.msk.f32.gmra.mxu2 %vm324_vm1, %v305_v33  ;;  %1126 = vmatmul.msk.f32.gmra.mxu3 %vm324_vm1, %v307_v34  ;;  %v573_v33 = vadd.s32 32, %v1803_v22  ;;  %vm1833_vm5 = vcmp.ne.s32.totalorder %v1222_v31, 0  ;;  %v724_v34 = vld [vmem:[#allocation4] sm:$0xff] }
  0x92   : > { %v1708_v44 = vpop.permute.xlu2 %638 }
  0x9a   : > { %v1714_v47 = vpop.permute.xlu2 %647 }
  0xa2   : > { %v1724_v52 = vpop.permute.xlu2 %656 }
  0xaa   : > { %v1702_v43 = vpop.permute.xlu0 %635 }
  0xab   : > { %v1712_v46 = vpop.permute.xlu1 %641 }
  0xb2   : > { %v1710_v45 = vpop.permute.xlu0 %644 }
  0xb3   : > { %v1718_v49 = vpop.permute.xlu1 %650 }
  0xba   : > { %v1716_v48 = vpop.permute.xlu0 %653 }
  0xee   : > { %v1660_v35 = vpop.f32.mrf.mxu0  ;;  %v1662_v36 = vpop.f32.mrf.mxu1 }
  0xef   : > { %450 = vmax.xlane.f32.xlu1 %v1662_v36  ;;  %446 = vmax.xlane.f32.xlu0 %v1660_v35 }
  0xf5   : > { %v1666_v37 = vpop.f32.mrf.mxu2  ;;  %v1668_v38 = vpop.f32.mrf.mxu3 }
  0xf6   : > { %454 = vmax.xlane.f32.xlu2 %v1666_v37  ;;  %v1671_v39 = vpop.f32.mrf.mxu1  ;;  %v1675_v40 = vpop.f32.mrf.mxu0 }
  0xf7   : > { %458 = vmax.xlane.f32.xlu0 %v1668_v38  ;;  %452 = vmax.xlane.f32.xlu1 %v1671_v39 }
  0xfd   : > { %v1677_v41 = vpop.f32.mrf.mxu2  ;;  %v1679_v42 = vpop.f32.mrf.mxu3 }
  0xfe   : > { %456 = vmax.xlane.f32.xlu2 %v1677_v41 }
  0xff   : > { %448 = vmax.xlane.f32.xlu0 %v1675_v40  ;;  %460 = vmax.xlane.f32.xlu1 %v1679_v42 }
 0x162   : > { %v451_v53 = vpop.xlane.xlu1 %450  ;;  %v447_v54 = vpop.xlane.xlu0 %446 }
 0x163   : > { %v1727_v55 = vmax.f32 %v1720_v50, %v451_v53  ;;  %v1730_v56 = vmax.f32 %v1722_v51, %v447_v54 }
 0x165   : > { %v472_v57 = vsub.f32 %v1720_v50, %v1727_v55  ;;  %774 = vst.msk [vmem:[#allocation2 + $0x10] sm:$0xff] %vm715_vm2, %v1727_v55  ;;  %v470_v58 = vsub.f32 %v1722_v51, %v1730_v56  ;;  %506 = vperm.xlu1 %1308, %v1727_v55   ;;  %496 = vperm.xlu2 %1307, %v1730_v56   ;;  %v728_v55 = vld [vmem:[#allocation4 + $0x20] sm:$0xff] }
 0x166   : > { %772 = vst.msk [vmem:[#allocation2] sm:$0xff] %vm715_vm2, %v1730_v56 }
 0x167   : > { %v482_v51 = vmul.f32 1.442695, %v472_v57  ;;  %v677_v57 = vld [vmem:[#allocation3 + $0x10] sm:$0xff] }
 0x169   : > { %v455_v62 = vpop.xlane.xlu2 %454 }
 0x16a   : > { %v1749_v63 = vmax.f32 %v1742_v59, %v455_v62  ;;  %v459_v0 = vpop.xlane.xlu0 %458  ;;  %v453_v1 = vpop.xlane.xlu1 %452  ;;  %v1842_v62 = vld [vmem:[%s252_s27] ss:$0 sm:$0xff] }
 0x16b   : > { %v1752_v2 = vmax.f32 %v1744_v60, %v459_v0  ;;  %v1755_v3 = vmax.f32 %v1746_v61, %v453_v1  ;;  %v582_v1 = vadd.s32 %v1808_v24, %v573_v33  ;;  %vm659_vm6 = vcmp.eq.s32.totalorder %v1702_v43, %v1842_v62 }
 0x16c   : > { %v474_v4 = vsub.f32 %v1742_v59, %v1749_v63  ;;  %776 = vst.msk [vmem:[#allocation2 + $0x20] sm:$0xff] %vm715_vm2, %v1749_v63  ;;  %vm663_vm8 = vcmp.eq.s32.totalorder %v1714_v47, %v1842_v62  ;;  %vm665_vm10 = vcmp.eq.s32.totalorder %v1716_v48, %v1842_v62  ;;  %vm661_vm13 = vcmp.eq.s32.totalorder %v1712_v46, %v1842_v62 }
 0x16d   : > { %v476_v5 = vsub.f32 %v1744_v60, %v1752_v2  ;;  %778 = vst.msk [vmem:[#allocation2 + $0x30] sm:$0xff] %vm715_vm2, %v1752_v2  ;;  %516 = vperm.xlu2 %1307, %v1749_v63   ;;  %v473_v6 = vsub.f32 %v1746_v61, %v1755_v3  ;;  %vm594_vm7 = vcmp.ne.s32.totalorder %v582_v1, %v1824_v28 }
 0x16e   : > { %775 = vst.msk [vmem:[#allocation2 + $0x18] sm:$0xff] %vm715_vm2, %v1755_v3  ;;  %vm662_vm14 = vcmp.eq.s32.totalorder %v1710_v45, %v1842_v62  ;;  %vm660_vm0 = vcmp.eq.s32.totalorder %v1708_v44, %v1842_v62  ;;  %v486_v56 = vmul.f32 1.442695, %v474_v4 }
 0x171   : > { %v457_v10 = vpop.xlane.xlu2 %456 }
 0x172   : > { %v1777_v11 = vmax.f32 %v1770_v7, %v457_v10  ;;  %v449_v12 = vpop.xlane.xlu0 %448  ;;  %v461_v13 = vpop.xlane.xlu1 %460 }
 0x173   : > { %v1780_v14 = vmax.f32 %v1772_v8, %v449_v12  ;;  %v1783_v15 = vmax.f32 %v1774_v9, %v461_v13 }
 0x174   : > { %v475_v16 = vsub.f32 %v1770_v7, %v1777_v11  ;;  %777 = vst.msk [vmem:[#allocation2 + $0x28] sm:$0xff] %vm715_vm2, %v1777_v11  ;;  %521 = vperm.xlu1 %1308, %v1777_v11  }
 0x175   : > { %v471_v17 = vsub.f32 %v1772_v8, %v1780_v14  ;;  %773 = vst.msk [vmem:[#allocation2 + $0x8] sm:$0xff] %vm715_vm2, %v1780_v14  ;;  %526 = vperm.xlu2 %1307, %v1752_v2   ;;  %501 = vperm.xlu0 %1306, %v1780_v14   ;;  %v477_v18 = vsub.f32 %v1774_v9, %v1783_v15  ;;  %v679_v14 = vld [vmem:[#allocation3 + $0x20] sm:$0xff] }
 0x176   : > { %779 = vst.msk [vmem:[#allocation2 + $0x38] sm:$0xff] %vm715_vm2, %v1783_v15  ;;  %v488_v9 = vmul.f32 1.442695, %v475_v16 }
 0x17c   : > { %531 = vperm.xlu1 %1308, %v1783_v15  }
 0x17d   : > { %511 = vperm.xlu2 %1307, %v1755_v3   ;;  %v678_v3 = vld [vmem:[#allocation3 + $0x18] sm:$0xff] }
 0x1bf   : > { %v497_v20 = vpop.permute.xlu2 %496 }
 0x1c0   : > { %v534_v21 = vsub.f32 %v1660_v35, %v497_v20  ;;  %v575_v20 = vadd.s32 48, %v1803_v22 }
 0x1c2   : > { %v542_v26 = vmul.f32 1.442695, %v534_v21  ;;  %v584_v27 = vadd.s32 %v1808_v24, %v575_v20 }
 0x1c4   : > { %1310 = vpow2.f32 %v542_v26  ;;  %vm596_vm9 = vcmp.ne.s32.totalorder %v584_v27, %v1824_v28 }
 0x1c7   : > { %v517_v30 = vpop.permute.xlu2 %516 }
 0x1c8   : > { %v538_v32 = vsub.f32 %v1666_v37, %v517_v30 }
 0x1ca   : > { %v1311_v35 = vpop.eup %1310  ;;  %v550_v53 = vmul.f32 1.442695, %v538_v32 }
 0x1cb   : > { %v598_v37 = vsel %vm590_vm3, %v1311_v35, 0.0 }
 0x1cc   : > { %1312 = vpow2.f32 %v550_v53  ;;  %v1192_v0 = vsel %vm1829_vm4, %v598_v37, 0  ;;  %v572_v53 = vadd.s32 24, %v1803_v22 }
 0x1cd   : > { %v1224_v10 = vsel %vm1833_vm5, %v1311_v35, %v1192_v0  ;;  %v571_v35 = vadd.s32 16, %v1803_v22 }
 0x1ce   : > { %691 = vadd.xlane.f32.xlu1 %v1224_v10  ;;  %v667_v12 = vsel %vm659_vm6, %v1224_v10, 0.0  ;;  %vm666_vm6 = vcmp.eq.s32.totalorder %v1724_v52, %v1842_v62  ;;  %v478_v52 = vmul.f32 1.442695, %v470_v58 }
 0x1cf   : > { %v527_v13 = vpop.permute.xlu2 %526  ;;  %740 = vadd.xlane.f32.xlu0 %v667_v12  ;;  %v580_v12 = vadd.s32 %v1808_v24, %v571_v35  ;;  %v570_v35 = vadd.s32 8, %v1803_v22 }
 0x1d0   : > { %v540_v19 = vsub.f32 %v1668_v38, %v527_v13 }
 0x1d1   : > { %vm592_vm11 = vcmp.ne.s32.totalorder %v580_v12, %v1824_v28 }
 0x1d2   : > { %v1313_v21 = vpop.eup %1312  ;;  %v554_v25 = vmul.f32 1.442695, %v540_v19 }
 0x1d3   : > { %v602_v26 = vsel %vm594_vm7, %v1313_v21, 0.0  ;;  %vm664_vm7 = vcmp.eq.s32.totalorder %v1718_v49, %v1842_v62  ;;  %v490_v49 = vmul.f32 1.442695, %v476_v5 }
 0x1d4   : > { %1314 = vpow2.f32 %v554_v25  ;;  %v1208_v43 = vsel %vm1829_vm4, %v602_v26, 0 }
 0x1d5   : > { %v1861_v29 = vsel %vm1833_vm5, %v1313_v21, %v1208_v43 }
 0x1d6   : > { %v671_v38 = vsel %vm663_vm8, %v1861_v29, 0.0 }
 0x1d7   : > { %v507_v30 = vpop.permute.xlu1 %506  ;;  %v512_v31 = vpop.permute.xlu2 %511 }
 0x1d8   : > { %v536_v32 = vsub.f32 %v1662_v36, %v507_v30  ;;  %v537_v33 = vsub.f32 %v1671_v39, %v512_v31  ;;  %v581_v39 = vadd.s32 %v1808_v24, %v572_v53 }
 0x1da   : > { %v1315_v37 = vpop.eup %1314  ;;  %v546_v47 = vmul.f32 1.442695, %v536_v32  ;;  %v548_v0 = vmul.f32 1.442695, %v537_v33  ;;  %vm593_vm12 = vcmp.ne.s32.totalorder %v581_v39, %v1824_v28 }
 0x1db   : > { %v604_v1 = vsel %vm596_vm9, %v1315_v37, 0.0 }
 0x1dc   : > { %1316 = vpow2.f32 %v546_v47  ;;  %v1216_v10 = vsel %vm1829_vm4, %v604_v1, 0  ;;  %v579_v47 = vadd.s32 %v1808_v24, %v570_v35  ;;  %v576_v1 = vadd.s32 56, %v1803_v22 }
 0x1dd   : > { %1318 = vpow2.f32 %v548_v0  ;;  %v1248_v36 = vsel %vm1833_vm5, %v1315_v37, %v1216_v10  ;;  %v484_v35 = vmul.f32 1.442695, %v473_v6  ;;  %v726_v6 = vld [vmem:[#allocation4 + $0x10] sm:$0xff] }
 0x1de   : > { %703 = vadd.xlane.f32.xlu1 %v1248_v36  ;;  %v1877_v13 = vsel %vm665_vm10, %v1248_v36, 0.0  ;;  %vm591_vm15 = vcmp.ne.s32.totalorder %v579_v47, %v1824_v28  ;;  %v585_v36 = vadd.s32 %v1808_v24, %v576_v1 }
 0x1e0   : > { %vm597_vm1 = vcmp.ne.s32.totalorder %v585_v36, %v1824_v28  ;;  %v492_v36 = vmul.f32 1.442695, %v477_v18 }
 0x1e2   : > { %v1317_v19 = vpop.eup %1316 }
 0x1e3   : > { %v1319_v20 = vpop.eup %1318  ;;  %v600_v21 = vsel %vm592_vm11, %v1317_v19, 0.0 }
 0x1e4   : > { %v1200_v25 = vsel %vm1829_vm4, %v600_v21, 0  ;;  %v601_v48 = vsel %vm593_vm12, %v1319_v20, 0.0 }
 0x1e5   : > { %v1232_v26 = vsel %vm1833_vm5, %v1317_v19, %v1200_v25  ;;  %v1204_v27 = vsel %vm1829_vm4, %v601_v48, 0 }
 0x1e6   : > { %v522_v43 = vpop.permute.xlu1 %521  ;;  %695 = vadd.xlane.f32.xlu2 %v1232_v26  ;;  %748 = vadd.xlane.f32.xlu1 %v671_v38  ;;  %v669_v30 = vsel %vm661_vm13, %v1232_v26, 0.0  ;;  %v1236_v31 = vsel %vm1833_vm5, %v1319_v20, %v1204_v27 }
 0x1e7   : > { %v502_v32 = vpop.permute.xlu0 %501  ;;  %v670_v33 = vsel %vm662_vm14, %v1236_v31, 0.0  ;;  %v539_v53 = vsub.f32 %v1677_v41, %v522_v43 }
 0x1e8   : > { %v535_v46 = vsub.f32 %v1675_v40, %v502_v32  ;;  %v574_v40 = vadd.s32 40, %v1803_v22 }
 0x1e9   : > { %v552_v45 = vmul.f32 1.442695, %v539_v53 }
 0x1ea   : > { %v544_v37 = vmul.f32 1.442695, %v535_v46  ;;  %v583_v19 = vadd.s32 %v1808_v24, %v574_v40 }
 0x1ec   : > { %1320 = vpow2.f32 %v544_v37  ;;  %vm595_vm3 = vcmp.ne.s32.totalorder %v583_v19, %v1824_v28 }
 0x1ed   : > { %1322 = vpow2.f32 %v552_v45 }
 0x1ee   : > { %v532_v0 = vpop.permute.xlu1 %531  ;;  %744 = vadd.xlane.f32.xlu2 %v669_v30  ;;  %697 = vadd.xlane.f32.xlu1 %v1236_v31  ;;  %v675_v30 = vld [vmem:[#allocation3] sm:$0xff] }
 0x1ef   : > { %v541_v38 = vsub.f32 %v1679_v42, %v532_v0  ;;  %v480_v0 = vmul.f32 1.442695, %v471_v17  ;;  %v676_v17 = vld [vmem:[#allocation3 + $0x8] sm:$0xff] }
 0x1f1   : > { %v556_v10 = vmul.f32 1.442695, %v541_v38 }
 0x1f2   : > { %v1321_v12 = vpop.eup %1320 }
 0x1f3   : > { %1324 = vpow2.f32 %v556_v10  ;;  %v599_v41 = vsel %vm591_vm15, %v1321_v12, 0.0  ;;  %v1323_v20 = vpop.eup %1322 }
 0x1f4   : > { %v1196_v39 = vsel %vm1829_vm4, %v599_v41, 0  ;;  %v603_v26 = vsel %vm595_vm3, %v1323_v20, 0.0  ;;  %1326 = vpow2.f32 %v478_v52 }
 0x1f5   : > { %v1228_v42 = vsel %vm1833_vm5, %v1321_v12, %v1196_v39  ;;  %1328 = vpow2.f32 %v490_v49  ;;  %v725_v39 = vld [vmem:[#allocation4 + $0x8] sm:$0xff] }
 0x1f6   : > { %699 = vadd.xlane.f32.xlu2 %v1861_v29  ;;  %693 = vadd.xlane.f32.xlu0 %v1228_v42  ;;  %v668_v22 = vsel %vm660_vm0, %v1228_v42, 0.0  ;;  %v1212_v29 = vsel %vm1829_vm4, %v603_v26, 0  ;;  %1330 = vpow2.f32 %v482_v51  ;;  %v682_v26 = vld [vmem:[#allocation3 + $0x38] sm:$0xff] }
 0x1f7   : > { %742 = vadd.xlane.f32.xlu1 %v668_v22  ;;  %v1244_v28 = vsel %vm1833_vm5, %v1323_v20, %v1212_v29  ;;  %1332 = vpow2.f32 %v486_v56  ;;  %v731_v29 = vld [vmem:[#allocation4 + $0x38] sm:$0xff] }
 0x1f8   : > { %v672_v27 = vsel %vm664_vm7, %v1244_v28, 0.0  ;;  %1334 = vpow2.f32 %v484_v35 }
 0x1f9   : > { %v1325_v21 = vpop.eup %1324  ;;  %1336 = vpow2.f32 %v480_v0 }
 0x1fa   : > { %v605_v25 = vsel %vm597_vm1, %v1325_v21, 0.0  ;;  %v1327_v43 = vpop.eup %1326  ;;  %1338 = vpow2.f32 %v492_v36 }
 0x1fb   : > { %v1220_v44 = vsel %vm1829_vm4, %v605_v25, 0  ;;  %v683_v31 = vmul.f32 %v1327_v43, %v675_v30  ;;  %v732_v54 = vmul.f32 %v1327_v43, %v724_v34  ;;  %v1939_v58 = vpop.eup %1328  ;;  %1340 = vpow2.f32 %v488_v9 }
 0x1fc   : > { %v1252_v48 = vsel %vm1833_vm5, %v1325_v21, %v1220_v44  ;;  %v1331_v53 = vpop.eup %1330 }
 0x1fd   : > { %v674_v24 = vsel %vm666_vm6, %v1252_v48, 0.0  ;;  %v1333_v50 = vpop.eup %1332  ;;  %v685_v63 = vmul.f32 %v1331_v53, %v677_v57  ;;  %v734_v1 = vmul.f32 %v1331_v53, %v726_v6 }
 0x1fe   : > { %705 = vadd.xlane.f32.xlu2 %v1252_v48  ;;  %746 = vadd.xlane.f32.xlu0 %v670_v33  ;;  %v736_v59 = vmul.f32 %v1333_v50, %v728_v55  ;;  %v1335_v61 = vpop.eup %1334  ;;  %v687_v42 = vmul.f32 %v1333_v50, %v679_v14 }
 0x1ff   : > { %754 = vadd.xlane.f32.xlu1 %v674_v24  ;;  %v686_v38 = vmul.f32 %v1335_v61, %v678_v3  ;;  %v1337_v8 = vpop.eup %1336  ;;  %v727_v24 = vld [vmem:[#allocation4 + $0x18] sm:$0xff] }
 0x200   : > { %v684_v19 = vmul.f32 %v1337_v8, %v676_v17  ;;  %v733_v21 = vmul.f32 %v1337_v8, %v725_v39  ;;  %v1339_v18 = vpop.eup %1338 }
 0x201   : > { %v739_v30 = vmul.f32 %v1339_v18, %v731_v29 }
 0x206   : > { %750 = vadd.xlane.f32.xlu2 %v672_v27  ;;  %701 = vadd.xlane.f32.xlu0 %v1244_v28  ;;  %v690_v28 = vmul.f32 %v1339_v18, %v682_v26  ;;  %v735_v27 = vmul.f32 %v1335_v61, %v727_v24 }
 0x20e   : > { %752 = vadd.xlane.f32.xlu0 %v1877_v13  ;;  %v681_v13 = vld [vmem:[#allocation3 + $0x30] sm:$0xff] }
 0x20f   : > { %v689_v60 = vmul.f32 %v1939_v58, %v681_v13  ;;  %v730_v13 = vld [vmem:[#allocation4 + $0x30] sm:$0xff] }
 0x241   : > { %v692_v32 = vpop.xlane.xlu1 %691 }
 0x242   : > { %v707_v33 = vadd.f32 %v692_v32, %v683_v31  ;;  %v741_v46 = vpop.xlane.xlu0 %740  ;;  %v1341_v31 = vpop.eup %1340  ;;  %v729_v32 = vld [vmem:[#allocation4 + $0x28] sm:$0xff] }
 0x243   : > { %v756_v62 = vadd.f32 %v741_v46, %v732_v54  ;;  %v680_v54 = vld [vmem:[#allocation3 + $0x28] sm:$0xff] }
 0x244   : > { %716 = vst.msk [vmem:[#allocation3] sm:$0xff] %vm715_vm2, %v707_v33  ;;  %v737_v33 = vmul.f32 %v1341_v31, %v729_v32  ;;  %v688_v46 = vmul.f32 %v1341_v31, %v680_v54 }
 0x245   : > { %764 = vst.msk [vmem:[#allocation4] sm:$0xff] %vm715_vm2, %v756_v62 }
 0x251   : > { %v704_v2 = vpop.xlane.xlu1 %703 }
 0x252   : > { %v713_v5 = vadd.f32 %v704_v2, %v689_v60  ;;  %v738_v60 = vmul.f32 %v1939_v58, %v730_v13 }
 0x254   : > { %722 = vst.msk [vmem:[#allocation3 + $0x30] sm:$0xff] %vm715_vm2, %v713_v5 }
 0x259   : > { %v749_v4 = vpop.xlane.xlu1 %748  ;;  %v696_v37 = vpop.xlane.xlu2 %695 }
 0x25a   : > { %v760_v47 = vadd.f32 %v749_v4, %v736_v59  ;;  %v709_v45 = vadd.f32 %v696_v37, %v685_v63 }
 0x25c   : > { %768 = vst.msk [vmem:[#allocation4 + $0x20] sm:$0xff] %vm715_vm2, %v760_v47 }
 0x25d   : > { %718 = vst.msk [vmem:[#allocation3 + $0x10] sm:$0xff] %vm715_vm2, %v709_v45 }
 0x261   : > { %v698_v10 = vpop.xlane.xlu1 %697  ;;  %v745_v40 = vpop.xlane.xlu2 %744 }
 0x262   : > { %v710_v12 = vadd.f32 %v698_v10, %v686_v38  ;;  %v758_v41 = vadd.f32 %v745_v40, %v734_v1 }
 0x264   : > { %719 = vst.msk [vmem:[#allocation3 + $0x18] sm:$0xff] %vm715_vm2, %v710_v12 }
 0x265   : > { %766 = vst.msk [vmem:[#allocation4 + $0x10] sm:$0xff] %vm715_vm2, %v758_v41 }
 0x269   : > { %v700_v22 = vpop.xlane.xlu2 %699  ;;  %v694_v20 = vpop.xlane.xlu0 %693 }
 0x26a   : > { %v711_v25 = vadd.f32 %v700_v22, %v687_v42  ;;  %v708_v44 = vadd.f32 %v694_v20, %v684_v19  ;;  %v743_v48 = vpop.xlane.xlu1 %742 }
 0x26b   : > { %v757_v15 = vadd.f32 %v743_v48, %v733_v21 }
 0x26c   : > { %720 = vst.msk [vmem:[#allocation3 + $0x20] sm:$0xff] %vm715_vm2, %v711_v25 }
 0x26d   : > { %717 = vst.msk [vmem:[#allocation3 + $0x8] sm:$0xff] %vm715_vm2, %v708_v44 }
 0x26e   : > { %765 = vst.msk [vmem:[#allocation4 + $0x8] sm:$0xff] %vm715_vm2, %v757_v15 }
 0x271   : > { %v706_v52 = vpop.xlane.xlu2 %705  ;;  %v747_v43 = vpop.xlane.xlu0 %746 }
 0x272   : > { %v714_v34 = vadd.f32 %v706_v52, %v690_v28  ;;  %v759_v7 = vadd.f32 %v747_v43, %v735_v27  ;;  %v755_v11 = vpop.xlane.xlu1 %754 }
 0x273   : > { %v763_v16 = vadd.f32 %v755_v11, %v739_v30 }
 0x274   : > { %723 = vst.msk [vmem:[#allocation3 + $0x38] sm:$0xff] %vm715_vm2, %v714_v34 }
 0x275   : > { %767 = vst.msk [vmem:[#allocation4 + $0x18] sm:$0xff] %vm715_vm2, %v759_v7 }
 0x276   : > { %771 = vst.msk [vmem:[#allocation4 + $0x38] sm:$0xff] %vm715_vm2, %v763_v16 }
 0x279   : > { %v751_v49 = vpop.xlane.xlu2 %750  ;;  %v702_v62 = vpop.xlane.xlu0 %701 }
 0x27a   : > { %v761_v51 = vadd.f32 %v751_v49, %v737_v33  ;;  %v712_v56 = vadd.f32 %v702_v62, %v688_v46 }
 0x27c   : > { %769 = vst.msk [vmem:[#allocation4 + $0x28] sm:$0xff] %vm715_vm2, %v761_v51 }
 0x27d   : > { %721 = vst.msk [vmem:[#allocation3 + $0x28] sm:$0xff] %vm715_vm2, %v712_v56 }
 0x280   : > { %783 = sbr.rel (%p1129_p12) target bundleno = 812 (0x32c), region = 52 }
 0x281   : > { %v753_v2 = vpop.xlane.xlu0 %752 }
 0x282   : > { %v762_v5 = vadd.f32 %v753_v2, %v738_v60 }
 0x284   : > { %770 = vst.msk [vmem:[#allocation4 + $0x30] sm:$0xff] %vm715_vm2, %v762_v5 }
 0x285   : > { %v786_v35 = vld [vmem:[#allocation4 + $0x10] sm:$0xff]  ;;  %v1970_v53 = vld [vmem:[#allocation4 + $0x18] sm:$0xff]  ;;  %v1440_v55 = vmov 0   ;;  %v784_v58 = vld [vmem:[#allocation4] sm:$0xff]  ;;  %v1441_v6 = vmov 0.0   ;;  %vm882_vm13 = vcmp.eq.s32.totalorder %v1805_v23, 0 }
 0x286   : > { %v794_v50 = vld [vmem:[#allocation3 + $0x10] sm:$0xff]  ;;  %1349 = vset.pattern.permute.xlu1 %v1440_v55  ;;  %1348 = vset.pattern.permute.xlu0 %v1440_v55  ;;  %v827_v59 = vmax.f32 %v1970_v53, 1e-08  ;;  %v826_v63 = vmax.f32 %v786_v35, 1e-08  ;;  %v785_v4 = vld [vmem:[#allocation4 + $0x8] sm:$0xff] }
 0x287   : > { %v802_v57 = vmax.f32 %v794_v50, 1e-08  ;;  %1342 = vset.pattern.permute.xlu2 %v1440_v55  ;;  %v793_v37 = vld [vmem:[#allocation3 + $0x8] sm:$0xff]  ;;  %vm856_vm2 = vcmp.gt.f32.partialorder %v784_v58, 1e-08  ;;  %v792_v47 = vld [vmem:[#allocation3] sm:$0xff] }
 0x288   : > { %v801_v45 = vmax.f32 %v793_v37, 1e-08  ;;  %v825_v0 = vmax.f32 %v785_v4, 1e-08  ;;  %v795_v61 = vld [vmem:[#allocation3 + $0x18] sm:$0xff]  ;;  %v1973_v3 = vld [vmem:[#allocation4 + $0x20] sm:$0xff] }
 0x289   : > { %1365 = vlog2.f32 %v802_v57  ;;  %vm857_vm4 = vcmp.gt.f32.partialorder %v785_v4, 1e-08  ;;  %v1976_v38 = vsel %vm856_vm2, 1.0, %v1441_v6  ;;  %v824_v1 = vmax.f32 %v784_v58, 1e-08  ;;  %v796_v10 = vld [vmem:[#allocation3 + $0x20] sm:$0xff] }
 0x28a   : > { %1367 = vlog2.f32 %v827_v59  ;;  %v1979_v40 = vsel %vm857_vm4, 1.0, %v1441_v6  ;;  %v800_v12 = vmax.f32 %v792_v47, 1e-08  ;;  %v803_v41 = vmax.f32 %v795_v61, 1e-08  ;;  %v1983_v14 = vld [vmem:[#allocation4 + $0x38] sm:$0xff] }
 0x28b   : > { %1369 = vlog2.f32 %v826_v63  ;;  %v1343_v36 = vpack.i.bf16 %v1979_v40, %v1976_v38  ;;  %v804_v8 = vmax.f32 %v796_v10, 1e-08  ;;  %v799_v17 = vld [vmem:[#allocation3 + $0x38] sm:$0xff]  ;;  %v828_v39 = vmax.f32 %v1973_v3, 1e-08  ;;  %v1986_v22 = vld [vmem:[#allocation4 + $0x28] sm:$0xff] }
 0x28c   : > { %1371 = vlog2.f32 %v801_v45  ;;  %v807_v19 = vmax.f32 %v799_v17, 1e-08  ;;  %v797_v20 = vld [vmem:[#allocation3 + $0x28] sm:$0xff]  ;;  %vm858_vm5 = vcmp.gt.f32.partialorder %v786_v35, 1e-08  ;;  %v1989_v15 = vld [vmem:[#allocation4 + $0x30] sm:$0xff] }
 0x28d   : > { %1373 = vlog2.f32 %v825_v0  ;;  %1344 = vperm.xlu2 %1342, %v1343_v36   ;;  %v831_v44 = vmax.f32 %v1983_v14, 1e-08  ;;  %v805_v9 = vmax.f32 %v797_v20, 1e-08  ;;  %v798_v18 = vld [vmem:[#allocation3 + $0x30] sm:$0xff]  ;;  %v1993_v27 = vsel %vm858_vm5, 1.0, %v1441_v6 }
 0x28e   : > { %1375 = vlog2.f32 %v824_v1  ;;  %v829_v29 = vmax.f32 %v1986_v22, 1e-08  ;;  %v806_v52 = vmax.f32 %v798_v18, 1e-08  ;;  %v830_v34 = vmax.f32 %v1989_v15, 1e-08 }
 0x28f   : > { %v1366_v42 = vpop.eup %1365  ;;  %1377 = vlog2.f32 %v800_v12  ;;  %vm859_vm8 = vcmp.gt.f32.partialorder %v1970_v53, 1e-08  ;;  %vm860_vm9 = vcmp.gt.f32.partialorder %v1973_v3, 1e-08  ;;  %vm861_vm10 = vcmp.gt.f32.partialorder %v1986_v22, 1e-08 }
 0x290   : > { %v1368_v21 = vpop.eup %1367  ;;  %v813_v25 = vmul.f32 0.6931472, %v1366_v42  ;;  %1379 = vlog2.f32 %v803_v41  ;;  %v1133_v2 = vsel %vm859_vm8, 1.0, %v1441_v6  ;;  %v1134_v57 = vsel %vm860_vm9, 1.0, %v1441_v6 }
 0x291   : > { %v1370_v48 = vpop.eup %1369  ;;  %1381 = vlog2.f32 %v804_v8  ;;  %v839_v16 = vmul.f32 0.6931472, %v1368_v21  ;;  %vm863_vm11 = vcmp.gt.f32.partialorder %v1983_v14, 1e-08  ;;  %vm862_vm12 = vcmp.gt.f32.partialorder %v1989_v15, 1e-08 }
 0x292   : > { %v1372_v26 = vpop.eup %1371  ;;  %v837_v24 = vmul.f32 0.6931472, %v1370_v48  ;;  %1383 = vlog2.f32 %v828_v39  ;;  %v1137_v17 = vsel %vm863_vm11, 1.0, %v1441_v6  ;;  %v1136_v14 = vsel %vm862_vm12, 1.0, %v1441_v6 }
 0x293   : > { %v1374_v28 = vpop.eup %1373  ;;  %1385 = vlog2.f32 %v807_v19  ;;  %v811_v46 = vmul.f32 0.6931472, %v1372_v26  ;;  %v1360_v20 = vpack.i.bf16 %v1137_v17, %v1136_v14  ;;  %v1350_v21 = vpack.i.bf16 %v1133_v2, %v1993_v27 }
 0x294   : > { %v1376_v43 = vpop.eup %1375  ;;  %v850_v30 = vsub.f32 %v813_v25, %v837_v24  ;;  %1387 = vlog2.f32 %v831_v44  ;;  %v835_v49 = vmul.f32 0.6931472, %v1374_v28  ;;  %vm979_vm14 = vcmask 15360  }
 0x295   : > { %v1378_v7 = vpop.eup %1377  ;;  %v833_v11 = vmul.f32 0.6931472, %v1376_v43  ;;  %1389 = vlog2.f32 %v805_v9 }
 0x296   : > { %v1380_v31 = vpop.eup %1379  ;;  %v885_v32 = vmul.f32 %v1993_v27, %v850_v30  ;;  %v809_v54 = vmul.f32 0.6931472, %v1378_v7  ;;  %1391 = vlog2.f32 %v829_v29  ;;  %v849_v63 = vsub.f32 %v811_v46, %v835_v49 }
 0x297   : > { %v1382_v33 = vpop.eup %1381  ;;  %v815_v62 = vmul.f32 0.6931472, %v1380_v31  ;;  %1393 = vlog2.f32 %v806_v52 }
 0x298   : > { %v1384_v51 = vpop.eup %1383  ;;  %903 = vperm.xlu1 %1349, %v885_v32   ;;  %v848_v56 = vsub.f32 %v809_v54, %v833_v11  ;;  %v817_v13 = vmul.f32 0.6931472, %v1382_v33  ;;  %1395 = vlog2.f32 %v830_v34  ;;  %v884_v12 = vmul.f32 %v1979_v40, %v849_v63 }
 0x299   : > { %v1386_v60 = vpop.eup %1385  ;;  %v851_v5 = vsub.f32 %v815_v62, %v839_v16  ;;  %v841_v35 = vmul.f32 0.6931472, %v1384_v51 }
 0x29a   : > { %v1388_v50 = vpop.eup %1387  ;;  %v883_v55 = vmul.f32 %v1976_v38, %v848_v56  ;;  %v823_v47 = vmul.f32 0.6931472, %v1386_v60  ;;  %v1135_v38 = vsel %vm861_vm10, 1.0, %v1441_v6 }
 0x29b   : > { %v1390_v59 = vpop.eup %1389  ;;  %v852_v58 = vsub.f32 %v817_v13, %v841_v35  ;;  %v886_v37 = vmul.f32 %v1133_v2, %v851_v5  ;;  %v847_v53 = vmul.f32 0.6931472, %v1388_v50  ;;  %v1355_v40 = vpack.i.bf16 %v1135_v38, %v1134_v57 }
 0x29c   : > { %v1392_v4 = vpop.eup %1391  ;;  %893 = vperm.xlu0 %1348, %v883_v55   ;;  %v819_v45 = vmul.f32 0.6931472, %v1390_v59 }
 0x29d   : > { %v1394_v0 = vpop.eup %1393  ;;  %v887_v61 = vmul.f32 %v1134_v57, %v852_v58  ;;  %v843_v1 = vmul.f32 0.6931472, %v1392_v4  ;;  %v855_v41 = vsub.f32 %v823_v47, %v847_v53 }
 0x29e   : > { %v1396_v10 = vpop.eup %1395  ;;  %v821_v36 = vmul.f32 0.6931472, %v1394_v0 }
 0x29f   : > { %913 = vperm.xlu2 %1342, %v887_v61   ;;  %v853_v3 = vsub.f32 %v819_v45, %v843_v1  ;;  %v845_v8 = vmul.f32 0.6931472, %v1396_v10  ;;  %v890_v42 = vmul.f32 %v1137_v17, %v855_v41 }
 0x2a0   : > { %908 = vperm.xlu1 %1349, %v886_v37  }
 0x2a1   : > { %v888_v39 = vmul.f32 %v1135_v38, %v853_v3  ;;  %v854_v19 = vsub.f32 %v821_v36, %v845_v8 }
 0x2a3   : > { %v889_v22 = vmul.f32 %v1136_v14, %v854_v19 }
 0x2a4   : > { %898 = vperm.xlu0 %1348, %v884_v12  }
 0x2a7   : > { %918 = vperm.xlu2 %1342, %v888_v39  }
 0x2a8   : > { %928 = vperm.xlu1 %1349, %v890_v42  }
 0x2ac   : > { %923 = vperm.xlu0 %1348, %v889_v22  }
 0x2af   : > { %1361 = vperm.xlu2 %1342, %v1360_v20  }
 0x2b0   : > { %1356 = vperm.xlu1 %1349, %v1355_v40  }
 0x2b4   : > { %1351 = vperm.xlu0 %1348, %v1350_v21  }
 0x2e7   : > { %v1345_v25 = vpop.permute.xlu2 %1344 }
 0x2e8   : > { %v1346_v9 = vunpack.i.l.bf16 %v1345_v25  ;;  %v1347_v24 = vunpack.i.h.bf16 %v1345_v25 }
 0x2f9   : > { %v914_v44 = vpop.permute.xlu2 %913 }
 0x301   : > { %v919_v15 = vpop.permute.xlu2 %918 }
 0x309   : > { %v1362_v29 = vpop.permute.xlu2 %1361 }
 0x30a   : > { %v904_v48 = vpop.permute.xlu1 %903  ;;  %v1364_v52 = vunpack.i.h.bf16 %v1362_v29  ;;  %v1363_v34 = vunpack.i.l.bf16 %v1362_v29 }
 0x30e   : > { %v894_v6 = vpop.permute.xlu0 %893 }
 0x30f   : > { %v971_v18 = vsel %vm882_vm13, %v894_v6, %v1346_v9 }
 0x310   : > { %980 = vst.msk [vmem:[%s1524_s11] sm:$0xff] %vm979_vm14, %v971_v18 }
 0x312   : > { %v909_v26 = vpop.permute.xlu1 %908 }
 0x316   : > { %v899_v28 = vpop.permute.xlu0 %898 }
 0x317   : > { %v972_v27 = vsel %vm882_vm13, %v899_v28, %v1347_v24 }
 0x318   : > { %981 = vst.msk [vmem:[%s1524_s11 + $0x8] sm:$0xff] %vm979_vm14, %v972_v27 }
 0x31a   : > { %v929_v43 = vpop.permute.xlu1 %928 }
 0x31b   : > { %v978_v30 = vsel %vm882_vm13, %v929_v43, %v1364_v52 }
 0x31c   : > { %987 = vst.msk [vmem:[%s1524_s11 + $0x38] sm:$0xff] %vm979_vm14, %v978_v30 }
 0x31e   : > { %v924_v7 = vpop.permute.xlu0 %923 }
 0x31f   : > { %v977_v11 = vsel %vm882_vm13, %v924_v7, %v1363_v34 }
 0x320   : > { %986 = vst.msk [vmem:[%s1524_s11 + $0x30] sm:$0xff] %vm979_vm14, %v977_v11 }
 0x322   : > { %v1357_v16 = vpop.permute.xlu1 %1356 }
 0x323   : > { %v1359_v31 = vunpack.i.h.bf16 %v1357_v16  ;;  %v1358_v32 = vunpack.i.l.bf16 %v1357_v16 }
 0x325   : > { %v975_v54 = vsel %vm882_vm13, %v914_v44, %v1358_v32  ;;  %v976_v33 = vsel %vm882_vm13, %v919_v15, %v1359_v31 }
 0x326   : > { %984 = vst.msk [vmem:[%s1524_s11 + $0x20] sm:$0xff] %vm979_vm14, %v975_v54  ;;  %v1352_v46 = vpop.permute.xlu0 %1351 }
 0x327   : > { %985 = vst.msk [vmem:[%s1524_s11 + $0x28] sm:$0xff] %vm979_vm14, %v976_v33  ;;  %v1354_v49 = vunpack.i.h.bf16 %v1352_v46  ;;  %v1353_v62 = vunpack.i.l.bf16 %v1352_v46 }
 0x329   : > { %v974_v51 = vsel %vm882_vm13, %v909_v26, %v1354_v49  ;;  %v973_v56 = vsel %vm882_vm13, %v904_v48, %v1353_v62 }
 0x32a   : > { %983 = vst.msk [vmem:[%s1524_s11 + $0x18] sm:$0xff] %vm979_vm14, %v974_v51 }
 0x32b   : > { %982 = vst.msk [vmem:[%s1524_s11 + $0x10] sm:$0xff] %vm979_vm14, %v973_v56 }
 0x32c PF: > { %s14_s19 = sadd.s32 1, %s1435_s19   ;;  %s2073_s15 = smov %s1427_s17 }
 0x32d   : > { %p11_p13 = scmp.ge.s32.totalorder %s14_s19, 10   ;;  %s2074_s16 = smov %s1431_s18 }
 0x32e   : > { %s2075_s17 = smov %s2078_s20  ;;  %s2076_s18 = smov %s2082_s21 }
 0x32f   :  { %13 = sbr.rel (!%p11_p13) target bundleno = 3 (0x3), region = 91 }

</bundles_post_ra>
